<compile_context>
chip_gen: v7x
topology: tpu7x:2x2x1
jax: 0.10.0
libtpu: 0.0.40
codegen_flags: <defaults>
</compile_context>

<pallas_src>
import jax
import jax.numpy as jnp
from jax.experimental import pallas as pl
from jax.experimental.pallas import tpu as pltpu

N_SCALES = 3
LEAKY_SLOPE = 0.01
LANE = 128
SUBLANE = 8


# ----------------------- kernel 1: hoisted feature transform -----------------------

def feat_kernel(x_ref, wconv_ref, wres_ref, bres_ref, xwn_ref, xres_ref):
    """Per row-tile: X @ W_s for every scale (stored bf16) + residual Linear (f32).

    Per-scale dots against static ref slices keep the live set tiny (<= a few vregs)
    instead of materializing a packed [tm, 4*dp] temporary that spills.
    """
    x = x_ref[...]                                           # [tm, din_p]
    for s in range(N_SCALES):                                # static unroll
        xw = jnp.dot(x, wconv_ref[s], preferred_element_type=jnp.float32)
        xwn_ref[s] = xw.astype(xwn_ref.dtype)                # bf16 [tm, dp]
    xres_ref[...] = (jnp.dot(x, wres_ref[...], preferred_element_type=jnp.float32)
                     + bres_ref[...])                        # f32 [tm, dp]


# ------------- kernel 2: tiled aggregation + LeakyReLU + attention + residual -------

def mgcn_kernel(aT_ref, xwn_ref, xres_ref, bconv_ref, attw_ref, attb_ref,
                out_ref, acc_ref):
    """Grid = (num_dst_tiles ["parallel"], num_src_tiles ["arbitrary" contraction])."""
    k = pl.program_id(1)
    tk = aT_ref.shape[-1]

    @pl.when(k == 0)
    def _init():
        acc_ref[...] = jnp.zeros_like(acc_ref)

    # Inner loop is a pure bf16 MXU stream: normalization is pre-folded into the
    # adjacency and the feature transform was hoisted to feat_kernel.
    xwn_is_resident = xwn_ref.shape[1] != tk                 # static shape check
    if xwn_is_resident:
        kk = pl.multiple_of(k * tk, tk)
    for s in range(N_SCALES):                                # static unroll
        if xwn_is_resident:
            xwn_s = xwn_ref[s, pl.ds(kk, tk), :]             # bf16 [tk, dp]
        else:
            xwn_s = xwn_ref[s]
        acc_ref[s] += jnp.dot(aT_ref[s], xwn_s,
                              preferred_element_type=jnp.float32)   # [tm, dp]

    @pl.when(k == pl.num_programs(1) - 1)
    def _finalize():
        bconv = bconv_ref[...]                               # [n_scales, dp]

        outs = []
        for s in range(N_SCALES):
            o = acc_ref[s] + bconv[s:s + 1, :]
            outs.append(jnp.where(o > 0, o, LEAKY_SLOPE * o))          # LeakyReLU

        # attention logits as a sum of per-scale dots (no lane concat / relayout)
        logits = attb_ref[...]                               # [1, n_scales] broadcast
        for s in range(N_SCALES):
            logits = logits + jnp.dot(outs[s], attw_ref[s],
                                      preferred_element_type=jnp.float32)
        m = jnp.max(logits, axis=-1, keepdims=True)
        e = jnp.exp(logits - m)
        attn = e * pl.reciprocal(jnp.sum(e, axis=-1, keepdims=True), approx=True)

        h = outs[0] * attn[:, 0:1]
        for s in range(1, N_SCALES):
            h = h + outs[s] * attn[:, s:s + 1]

        # residual Linear precomputed once per node in feat_kernel -> just add
        out_ref[...] = (h + xres_ref[...]).astype(out_ref.dtype)   # lane-dense store


# ------------------------------------ wrapper ---------------------------------------

def _vmem_limit_bytes(need_bytes):
    """Scoped VMEM limit: 2x estimated need, floored at 16 MiB, capped at 80% of
    the physical per-core VMEM (<=~51 MiB on v7x, ~102 MiB on v5e/v6e)."""
    try:
        cap = int(pltpu.get_tpu_info().vmem_capacity_bytes)
    except Exception:
        cap = 128 * 2 ** 20
    return int(min(0.8 * cap, max(16 * 2 ** 20, 2 * need_bytes)))


def multi_scale_gcn(x, ahat_stack, conv_w, conv_b, attn_w, attn_b, res_w, res_b,
                    *, tm=128, tk=256):
    """x: [N, din]; ahat_stack: [3, N, N] adjacency (self loops included) per scale."""
    N, din = x.shape
    n_scales, _, dout = conv_w.shape
    assert n_scales == N_SCALES
    assert tk % tm == 0 and tk >= 2 * tm     # >= 2 dst tiles -> megacore shardable

    dp = LANE * pl.cdiv(dout, LANE)          # lane-dense padded output width
    din_p = SUBLANE * pl.cdiv(din, SUBLANE)  # sublane-aligned feature width
    n_pad = tk * pl.cdiv(N, tk)              # node count padded to a tile multiple

    # ---- glue: fold D^{-1/2} into A^T, pad, pack weights (plain JAX / XLA) ----
    deg = jnp.sum(ahat_stack, axis=1)                          # in-degree (col sums) [S, N]
    dinv = jax.lax.rsqrt(deg)                                  # [S, N]
    anorm_t = (dinv[:, :, None]
               * jnp.swapaxes(ahat_stack, 1, 2)                # [S, dst, src]
               * dinv[:, None, :]).astype(jnp.bfloat16)
    anorm_t = jnp.pad(anorm_t, ((0, 0), (0, n_pad - N), (0, n_pad - N)))

    x_pad = jnp.pad(x.astype(jnp.float32), ((0, n_pad - N), (0, din_p - din)))

    wconv = jnp.zeros((N_SCALES, din_p, dp), jnp.float32).at[:, :din, :dout].set(conv_w)
    wres = jnp.zeros((din_p, dp), jnp.float32).at[:din, :dout].set(res_w)
    bres = jnp.zeros((1, dp), jnp.float32).at[:, :dout].set(res_b.reshape(1, dout))
    bconv = jnp.zeros((N_SCALES, dp), jnp.float32).at[:, :dout].set(conv_b)
    attw = jnp.zeros((N_SCALES, dp, N_SCALES), jnp.float32)
    for s in range(N_SCALES):
        attw = attw.at[s, :dout, :].set(attn_w[s * dout:(s + 1) * dout, :])
    attb = attn_b.reshape(1, N_SCALES).astype(jnp.float32)

    # ---- kernel 1: feature transform, run once over all nodes ----
    xwn, xres = pl.pallas_call(
        feat_kernel,
        out_shape=(jax.ShapeDtypeStruct((N_SCALES, n_pad, dp), jnp.bfloat16),
                   jax.ShapeDtypeStruct((n_pad, dp), jnp.float32)),
        grid_spec=pltpu.PrefetchScalarGridSpec(
            num_scalar_prefetch=0,
            grid=(n_pad // tm,),
            in_specs=[
                pl.BlockSpec((tm, din_p), lambda i: (i, 0)),             # x rows
                pl.BlockSpec((N_SCALES, din_p, dp), lambda i: (0, 0, 0)),  # conv W (resident)
                pl.BlockSpec((din_p, dp), lambda i: (0, 0)),             # residual W
                pl.BlockSpec((1, dp), lambda i: (0, 0)),                 # residual b
            ],
            out_specs=(pl.BlockSpec((N_SCALES, tm, dp), lambda i: (0, i, 0)),
                       pl.BlockSpec((tm, dp), lambda i: (i, 0))),
        ),
        compiler_params=pltpu.CompilerParams(dimension_semantics=("parallel",)),
    )(x_pad, wconv, wres, bres)

    # ---- kernel 2: streamed aggregation over the normalized adjacency ----
    xwn_bytes = N_SCALES * n_pad * dp * 2
    xwn_resident = xwn_bytes <= 16 * 2 ** 20          # fits the tight v7x budget
    if xwn_resident:
        xwn_spec = pl.BlockSpec((N_SCALES, n_pad, dp), lambda i, k: (0, 0, 0))
    else:
        xwn_spec = pl.BlockSpec((N_SCALES, tk, dp), lambda i, k: (0, k, 0))

    need = (2 * N_SCALES * tm * tk * 2                               # A^T double buffer
            + (2 * xwn_bytes if xwn_resident else 2 * N_SCALES * tk * dp * 2)
            + 2 * tm * dp * 4                                        # xres blocks
            + 2 * tm * dp * 4                                        # out blocks
            + N_SCALES * tm * dp * 4                                 # acc scratch
            + 2 * (N_SCALES * dp * (1 + N_SCALES) + dp + N_SCALES) * 4)  # params
    vmem_limit = _vmem_limit_bytes(need)

    cost = pl.CostEstimate(
        flops=int(2 * N_SCALES * n_pad * n_pad * dp + 2 * n_pad * dp * N_SCALES * N_SCALES),
        transcendentals=int(n_pad * N_SCALES),
        bytes_accessed=int(N_SCALES * n_pad * n_pad * 2 + xwn_bytes + 2 * n_pad * dp * 4),
    )

    out_padded = pl.pallas_call(
        mgcn_kernel,
        out_shape=jax.ShapeDtypeStruct((n_pad, dp), jnp.float32),
        grid_spec=pltpu.PrefetchScalarGridSpec(
            num_scalar_prefetch=0,
            grid=(n_pad // tm, n_pad // tk),
            in_specs=[
                pl.BlockSpec((N_SCALES, tm, tk), lambda i, k: (0, i, k)),    # A_norm^T (bf16)
                xwn_spec,                                                    # X@W (bf16)
                pl.BlockSpec((tm, dp), lambda i, k: (i, 0)),                 # residual term
                pl.BlockSpec((N_SCALES, dp), lambda i, k: (0, 0)),           # conv biases
                pl.BlockSpec((N_SCALES, dp, N_SCALES), lambda i, k: (0, 0, 0)),  # attention W
                pl.BlockSpec((1, N_SCALES), lambda i, k: (0, 0)),            # attention b
            ],
            out_specs=pl.BlockSpec((tm, dp), lambda i, k: (i, 0)),
            scratch_shapes=[pltpu.VMEM((N_SCALES, tm, dp), jnp.float32)],
        ),
        compiler_params=pltpu.CompilerParams(
            dimension_semantics=("parallel", "arbitrary"),
            vmem_limit_bytes=vmem_limit,
        ),
        cost_estimate=cost,
    )(anorm_t, xwn, xres, bconv, attw, attb)

    return out_padded[:N, :dout]


# ----------------------- glue: graph preprocessing (plain JAX) -----------------------

def build_scale_adjacencies(adj):
    """Reproduce the loop's edge_index overwriting: A1=A, A2=bin(A1^2), A3=bin(A2^3)."""
    a1 = adj
    a2 = (a1 @ a1 > 0).astype(jnp.float32)
    a3 = (a2 @ a2 @ a2 > 0).astype(jnp.float32)
    eye = jnp.eye(adj.shape[0], dtype=jnp.float32)
    # GCNConv add_self_loops with weight-1 edges -> diag forced to 1
    return jnp.stack([jnp.maximum(a, eye) for a in (a1, a2, a3)], axis=0)


def reference_forward(x, ahat_stack, conv_w, conv_b, attn_w, attn_b, res_w, res_b):
    outs = []
    for s in range(N_SCALES):
        ahat = ahat_stack[s]
        deg = jnp.sum(ahat, axis=0)                  # in-degree (incl. self loops)
        dinv = 1.0 / jnp.sqrt(deg)
        xw = x @ conv_w[s]
        agg = dinv[:, None] * (ahat.T @ (xw * dinv[:, None]))
        o = agg + conv_b[s][None, :]
        outs.append(jnp.where(o > 0, o, LEAKY_SLOPE * o))
    h_cat = jnp.concatenate(outs, axis=-1)
    attn = jax.nn.softmax(h_cat @ attn_w + attn_b, axis=-1)
    h = sum(outs[s] * attn[:, s:s + 1] for s in range(N_SCALES))
    return h + x @ res_w + res_b


if __name__ == "__main__":
    # Small but exercises the full pipeline: 4 dst tiles x 2 contraction steps.
    N, Din, Dout = 512, 4, 8

    key = jax.random.PRNGKey(0)
    kx, kw, kb, kaw, kab, krw, krb = jax.random.split(key, 7)

    # node features
    x = jax.random.normal(kx, (N, Din), dtype=jnp.float32)

    # undirected ring graph
    src = jnp.arange(N)
    dst = (src + 1) % N
    adj = jnp.zeros((N, N), jnp.float32).at[src, dst].set(1.0).at[dst, src].set(1.0)

    ahat_stack = build_scale_adjacencies(adj)        # [3, N, N]

    # deterministic synthetic parameters
    conv_w = 0.1 * jax.random.normal(kw, (N_SCALES, Din, Dout), dtype=jnp.float32)
    conv_b = 0.1 * jax.random.normal(kb, (N_SCALES, Dout), dtype=jnp.float32)
    attn_w = 0.1 * jax.random.normal(kaw, (N_SCALES * Dout, N_SCALES), dtype=jnp.float32)
    attn_b = 0.1 * jax.random.normal(kab, (1, N_SCALES), dtype=jnp.float32)
    res_w = 0.1 * jax.random.normal(krw, (Din, Dout), dtype=jnp.float32)
    res_b = 0.1 * jax.random.normal(krb, (1, Dout), dtype=jnp.float32)

    out = multi_scale_gcn(x, ahat_stack, conv_w, conv_b, attn_w, attn_b, res_w, res_b)
    out = jax.block_until_ready(out)

    ref = reference_forward(x, ahat_stack, conv_w, conv_b, attn_w, attn_b, res_w, res_b)
    assert out.shape == (N, Dout)
    # bf16 normalized adjacency + bf16 X@W + approx reciprocal -> slightly loose tol
    max_err = float(jnp.max(jnp.abs(out - ref)))
    assert jnp.allclose(out, ref, atol=1e-2, rtol=1e-2), \
        f"mismatch vs JAX reference (max abs err {max_err})"

    print("KERNEL_OK")
</pallas_src>

<mosaic_0001>
module attributes {stable_mosaic.version = 11 : i64} {
  func.func @feat_kernel(%arg0: i32, %arg1: memref<128x8xf32, #tpu.memory_space<vmem>>, %arg2: memref<3x8x128xf32, #tpu.memory_space<vmem>>, %arg3: memref<8x128xf32, #tpu.memory_space<vmem>>, %arg4: memref<1x128xf32, #tpu.memory_space<vmem>>, %arg5: memref<3x128x128xbf16, #tpu.memory_space<vmem>>, %arg6: memref<128x128xf32, #tpu.memory_space<vmem>>) attributes {dimension_semantics = [#tpu.dimension_semantics<parallel>], iteration_bounds = array<i64: 4>, scalar_prefetch = 0 : i64, scratch_operands = 0 : i64, tpu.core_type = #tpu.core_type<tc>, window_params = [{transform_indices = @transform_0, window_bounds = array<i64: 128, 8>}, {pipeline_mode = #tpu.pipeline_mode<synchronous>, transform_indices = @transform_1, window_bounds = array<i64: 3, 8, 128>}, {pipeline_mode = #tpu.pipeline_mode<synchronous>, transform_indices = @transform_2, window_bounds = array<i64: 8, 128>}, {pipeline_mode = #tpu.pipeline_mode<synchronous>, transform_indices = @transform_3, window_bounds = array<i64: 1, 128>}, {transform_indices = @transform_4, window_bounds = array<i64: 3, 128, 128>}, {transform_indices = @transform_5, window_bounds = array<i64: 128, 128>}]} {
    %c0 = arith.constant 0 : index
    %c0_0 = arith.constant 0 : index
    %0 = vector.load %arg1[%c0, %c0_0] : memref<128x8xf32, #tpu.memory_space<vmem>>, vector<128x8xf32>
    %c0_1 = arith.constant 0 : index
    %c0_2 = arith.constant 0 : index
    %c0_3 = arith.constant 0 : index
    %1 = vector.load %arg2[%c0_1, %c0_2, %c0_3] : memref<3x8x128xf32, #tpu.memory_space<vmem>>, vector<1x8x128xf32>
    %2 = vector.shape_cast %1 : vector<1x8x128xf32> to vector<8x128xf32>
    %cst = arith.constant dense<0.000000e+00> : vector<128x128xf32>
    %3 = tpu.matmul %0, %2, %cst {dimension_numbers = #tpu.dot_dimension_numbers<[1], [0], [0], [1], [0, 0, 1, 1], [], []>} : vector<128x8xf32>, vector<8x128xf32>, vector<128x128xf32> -> vector<128x128xf32>
    %4 = arith.truncf %3 : vector<128x128xf32> to vector<128x128xbf16>
    %c0_4 = arith.constant 0 : index
    %c0_5 = arith.constant 0 : index
    %c0_6 = arith.constant 0 : index
    %5 = vector.load %arg5[%c0_4, %c0_5, %c0_6] : memref<3x128x128xbf16, #tpu.memory_space<vmem>>, vector<1x128x128xbf16>
    %6 = vector.shape_cast %5 : vector<1x128x128xbf16> to vector<128x128xbf16>
    %7 = vector.shape_cast %4 : vector<128x128xbf16> to vector<1x128x128xbf16>
    tpu.vector_store %arg5[%c0_4, %c0_5, %c0_6], %7 {strides = array<i32>} : memref<3x128x128xbf16, #tpu.memory_space<vmem>>, vector<1x128x128xbf16>,
    %c1 = arith.constant 1 : index
    %c0_7 = arith.constant 0 : index
    %c0_8 = arith.constant 0 : index
    %8 = vector.load %arg2[%c1, %c0_7, %c0_8] : memref<3x8x128xf32, #tpu.memory_space<vmem>>, vector<1x8x128xf32>
    %9 = vector.shape_cast %8 : vector<1x8x128xf32> to vector<8x128xf32>
    %cst_9 = arith.constant dense<0.000000e+00> : vector<128x128xf32>
    %10 = tpu.matmul %0, %9, %cst_9 {dimension_numbers = #tpu.dot_dimension_numbers<[1], [0], [0], [1], [0, 0, 1, 1], [], []>} : vector<128x8xf32>, vector<8x128xf32>, vector<128x128xf32> -> vector<128x128xf32>
    %11 = arith.truncf %10 : vector<128x128xf32> to vector<128x128xbf16>
    %c1_10 = arith.constant 1 : index
    %c0_11 = arith.constant 0 : index
    %c0_12 = arith.constant 0 : index
    %12 = vector.load %arg5[%c1_10, %c0_11, %c0_12] : memref<3x128x128xbf16, #tpu.memory_space<vmem>>, vector<1x128x128xbf16>
    %13 = vector.shape_cast %12 : vector<1x128x128xbf16> to vector<128x128xbf16>
    %14 = vector.shape_cast %11 : vector<128x128xbf16> to vector<1x128x128xbf16>
    tpu.vector_store %arg5[%c1_10, %c0_11, %c0_12], %14 {strides = array<i32>} : memref<3x128x128xbf16, #tpu.memory_space<vmem>>, vector<1x128x128xbf16>,
    %c2 = arith.constant 2 : index
    %c0_13 = arith.constant 0 : index
    %c0_14 = arith.constant 0 : index
    %15 = vector.load %arg2[%c2, %c0_13, %c0_14] : memref<3x8x128xf32, #tpu.memory_space<vmem>>, vector<1x8x128xf32>
    %16 = vector.shape_cast %15 : vector<1x8x128xf32> to vector<8x128xf32>
    %cst_15 = arith.constant dense<0.000000e+00> : vector<128x128xf32>
    %17 = tpu.matmul %0, %16, %cst_15 {dimension_numbers = #tpu.dot_dimension_numbers<[1], [0], [0], [1], [0, 0, 1, 1], [], []>} : vector<128x8xf32>, vector<8x128xf32>, vector<128x128xf32> -> vector<128x128xf32>
    %18 = arith.truncf %17 : vector<128x128xf32> to vector<128x128xbf16>
    %c2_16 = arith.constant 2 : index
    %c0_17 = arith.constant 0 : index
    %c0_18 = arith.constant 0 : index
    %19 = vector.load %arg5[%c2_16, %c0_17, %c0_18] : memref<3x128x128xbf16, #tpu.memory_space<vmem>>, vector<1x128x128xbf16>
    %20 = vector.shape_cast %19 : vector<1x128x128xbf16> to vector<128x128xbf16>
    %21 = vector.shape_cast %18 : vector<128x128xbf16> to vector<1x128x128xbf16>
    tpu.vector_store %arg5[%c2_16, %c0_17, %c0_18], %21 {strides = array<i32>} : memref<3x128x128xbf16, #tpu.memory_space<vmem>>, vector<1x128x128xbf16>,
    %c0_19 = arith.constant 0 : index
    %c0_20 = arith.constant 0 : index
    %22 = vector.load %arg3[%c0_19, %c0_20] : memref<8x128xf32, #tpu.memory_space<vmem>>, vector<8x128xf32>
    %cst_21 = arith.constant dense<0.000000e+00> : vector<128x128xf32>
    %23 = tpu.matmul %0, %22, %cst_21 {dimension_numbers = #tpu.dot_dimension_numbers<[1], [0], [0], [1], [0, 0, 1, 1], [], []>} : vector<128x8xf32>, vector<8x128xf32>, vector<128x128xf32> -> vector<128x128xf32>
    %c0_22 = arith.constant 0 : index
    %c0_23 = arith.constant 0 : index
    %24 = vector.load %arg4[%c0_22, %c0_23] : memref<1x128xf32, #tpu.memory_space<vmem>>, vector<1x128xf32>
    %25 = vector.broadcast %24 : vector<1x128xf32> to vector<128x128xf32>
    %26 = arith.addf %23, %25 : vector<128x128xf32>
    %c0_24 = arith.constant 0 : index
    %c0_25 = arith.constant 0 : index
    %27 = vector.load %arg6[%c0_24, %c0_25] : memref<128x128xf32, #tpu.memory_space<vmem>>, vector<128x128xf32>
    tpu.vector_store %arg6[%c0_24, %c0_25], %26 {strides = array<i32>} : memref<128x128xf32, #tpu.memory_space<vmem>>, vector<128x128xf32>,
    return
  }
  func.func @transform_0(%arg0: i32) -> (i32, i32) {
    %c0_i32 = arith.constant 0 : i32
    %c0_i32_0 = arith.constant 0 : i32
    return %arg0, %c0_i32 : i32, i32
  }
  func.func @transform_1(%arg0: i32) -> (i32, i32, i32) {
    %c0_i32 = arith.constant 0 : i32
    %c0_i32_0 = arith.constant 0 : i32
    %c0_i32_1 = arith.constant 0 : i32
    %c0_i32_2 = arith.constant 0 : i32
    return %c0_i32, %c0_i32_0, %c0_i32_1 : i32, i32, i32
  }
  func.func @transform_2(%arg0: i32) -> (i32, i32) {
    %c0_i32 = arith.constant 0 : i32
    %c0_i32_0 = arith.constant 0 : i32
    %c0_i32_1 = arith.constant 0 : i32
    return %c0_i32, %c0_i32_0 : i32, i32
  }
  func.func @transform_3(%arg0: i32) -> (i32, i32) {
    %c0_i32 = arith.constant 0 : i32
    %c0_i32_0 = arith.constant 0 : i32
    %c0_i32_1 = arith.constant 0 : i32
    return %c0_i32, %c0_i32_0 : i32, i32
  }
  func.func @transform_4(%arg0: i32) -> (i32, i32, i32) {
    %c0_i32 = arith.constant 0 : i32
    %c0_i32_0 = arith.constant 0 : i32
    %c0_i32_1 = arith.constant 0 : i32
    return %c0_i32, %arg0, %c0_i32_0 : i32, i32, i32
  }
  func.func @transform_5(%arg0: i32) -> (i32, i32) {
    %c0_i32 = arith.constant 0 : i32
    %c0_i32_0 = arith.constant 0 : i32
    return %arg0, %c0_i32 : i32, i32
  }
}

</mosaic_0001>

<bundles_post_ra>
// kernel: tpu_custom_call.1
= control target key start
LH: loop header
LB: loop body
LE: loop exit
PB: predicated region body
PF: predicated region fallthrough
CT: control target
= control target key end

     0   :  { %11 = vsyncpa [#allocation3], 0  ;;  %s2292_s0 = inlined_call_operand.vmem [shape: f32[512,8], index: 0, kind: input, shape index: {}]   ;;  %s2293_s1 = inlined_call_operand.vmem [shape: f32[3,8,128], index: 1, kind: input, shape index: {}]   ;;  %s2294_s2 = inlined_call_operand.vmem [shape: f32[8,128], index: 2, kind: input, shape index: {}]   ;;  %s2295_s3 = inlined_call_operand.vmem [shape: f32[1,128], index: 3, kind: input, shape index: {}]   ;;  %s2296_s4 = inlined_call_operand.hbm [shape: bf16[3,512,128], index: 4, kind: output, shape index: {0}]   ;;  %s2297_s5 = inlined_call_operand.hbm [shape: f32[512,128], index: 5, kind: output, shape index: {1}]  }
   0x1   :  { %13 = vsyncpa [#allocation3 + $0x1], 0 }
   0x2   :  { %14 = vsyncpa [#allocation5], 0 }
   0x3   :  { %16 = vsyncpa [#allocation5 + $0x1], 0  ;;  %s2006_s18 = smov 0   ;;  %s2008_s19 = smov 0  }
   0x4   :  { %s2010_s20 = smov 0   ;;  %s2012_s21 = smov 0  }
   0x5 LB: > { %s2027_s22 = sadd.s32 4294967295, %s1964_s21   ;;  %s1312_s23 = sadd.s32 4294967294, %s1964_s21   ;;  %s1964_s21 = sphi %s2012_s21, %s2303_s21   ;;  %s1960_s20 = sphi %s2010_s20, %s2302_s20   ;;  %s1956_s19 = sphi %s2008_s19, %s2301_s19   ;;  %s1952_s18 = sphi %s2006_s18, %s2300_s18  }
   0x6   : > { %s2031_s24 = sadd.s32 1, %s1964_s21   ;;  %s118_s25 = sadd.s32 1, %s1960_s20 }
   0x7   : > { %s115_s26 = ssub.s32 %s1964_s21, %s2031_s24  ;;  %p128_p0 = scmp.ne.s32.totalorder %s1960_s20, %s1956_s19 }
   0x8   : > { %p116_p1 = scmp.eq.s32.totalorder %s115_s26, 0  ;;  %p129_p2 = scmp.eq.s32.totalorder %s2027_s22, 3 }
   0x9   : > { %p134_p3 = scmp.ne.s32.totalorder %s1956_s19, %s1952_s18  ;;  %p135_p4 = scmp.eq.s32.totalorder %s1312_s23, 3 }
   0xa   : > { %s2042_s27 = scalar_select %p116_p1, %s1960_s20, %s118_s25  }
   0xb   : > { %p2044_p5 = por %p129_p2, %p128_p0  ;;  %p2048_p6 = por %p135_p4, %p134_p3 }
   0xc   : > { %p1315_p7 = scmp.ge.s32.totalorder %s1964_s21, 1  ;;  %p197_p8 = scmp.lt.s32.totalorder %s1964_s21, 5 }
   0xe   : > { %p198_p9 = pnand %p1315_p7, %p197_p8 }
   0xf   : > { %v254_v0 = vld [vmem:[%s2293_s1] sm:$0xff] (!%p198_p9)  ;;  %v1351_v1 = vld [vmem:[%s2293_s1 + $0x8] sm:$0xff] (!%p198_p9)  ;;  %s1317_s9 = sshll.u32 (!%p198_p9), %s2027_s22, 4  ;;  %v1400_v2 = vld [vmem:[%s2293_s1 + $0x10] sm:$0xff] (!%p198_p9)  ;;  %vm255_vm0 = vcmask (!%p198_p9), 64512   ;;  %s2153_s23 = sand.u32 (!%p198_p9), 1, %s1956_s19  }
  0x10   : > { %201 = sbr.rel (%p198_p9) target bundleno = 338 (0x152), region = 36  ;;  %1734 = vmatprep.subr.mxu0 (!%p198_p9), %v254_v0  ;;  %1760 = vmatprep.subr.mxu1 (!%p198_p9), %v1351_v1  ;;  %p231_p10 = scmp.lt.s32.totalorder (!%p198_p9), %s1317_s9, 63  ;;  %v985_v3 = vld [vmem:[%s2294_s2] sm:$0xff] (!%p198_p9) }
  0x11   : > { %1735 = vmatpush3.msra.mxu0 (!%p198_p9), %v254_v0  ;;  %1761 = vmatpush3.msra.mxu1 (!%p198_p9), %v1351_v1  ;;  %s1838_s25 = smul.u32 (!%p198_p9), 192, %s2153_s23  ;;  %s1316_s30 = sshll.u32 (!%p198_p9), %s2153_s23, 7 }
  0x12   : > { %1786 = vmatprep.subr.mxu0 (!%p198_p9), %v1400_v2  ;;  %1812 = vmatprep.subr.mxu1 (!%p198_p9), %v985_v3  ;;  %s2182_s8 = scalar_lea.vmem (!%p198_p9), [#allocation4], %s1316_s30  ;;  %s1160_s10 = scalar_lea.sflag (!%p198_p9), [#allocation5], %s2153_s23 }
  0x13   : > { %s2156_s26 = scalar_lea.vmem (!%p198_p9), [#allocation2], %s1838_s25 }
  0x17   : > { %s2305_s9 = smov (!%p231_p10, %s1317_s9), 63 }
  0x18   : > { %s1318_s14 = sshll.u32 %s2305_s9, 3  ;;  %s1155_s9 = scalar_lea.sflag [#allocation3], %s2153_s23 }
  0x19   : > { %s2070_s17 = scalar_lea.vmem %s2292_s0, %s1318_s14 }
  0x1a   : > { %v238_v4 = vld [vmem:[%s2070_s17] sm:$0xff]  ;;  %v239_v5 = vld [vmem:[%s2070_s17 + $0x8] sm:$0xff]  ;;  %v240_v6 = vld [vmem:[%s2070_s17 + $0x10] sm:$0xff] }
  0x1b   : > { %1736 = vmatprep.mubr.msk.f32.mxu0 %vm255_vm0, %v238_v4  ;;  %1762 = vmatprep.mubr.msk.f32.mxu1 %vm255_vm0, %v238_v4  ;;  %v241_v7 = vld [vmem:[%s2070_s17 + $0x18] sm:$0xff]  ;;  %v242_v8 = vld [vmem:[%s2070_s17 + $0x20] sm:$0xff]  ;;  %v243_v9 = vld [vmem:[%s2070_s17 + $0x28] sm:$0xff] }
  0x1c   : > { %1737 = vmatmul.mubr.msk.f32.vlgmr.msra.gmra.mrb[0].mxu0 %vm255_vm0, %v239_v5  ;;  %1763 = vmatmul.mubr.msk.f32.vlgmr.msra.gmra.mrb[0].mxu1 %vm255_vm0, %v239_v5  ;;  %v244_v10 = vld [vmem:[%s2070_s17 + $0x30] sm:$0xff]  ;;  %v245_v11 = vld [vmem:[%s2070_s17 + $0x38] sm:$0xff]  ;;  %v246_v12 = vld [vmem:[%s2070_s17 + $0x40] sm:$0xff] }
  0x1d   : > { %1787 = vmatpush3.msra.mxu0 %v1400_v2  ;;  %1813 = vmatpush3.msra.mxu1 %v985_v3  ;;  %v247_v13 = vld [vmem:[%s2070_s17 + $0x48] sm:$0xff]  ;;  %v248_v14 = vld [vmem:[%s2070_s17 + $0x50] sm:$0xff]  ;;  %v249_v15 = vld [vmem:[%s2070_s17 + $0x58] sm:$0xff] }
  0x1e   : > { %1739 = vmatprep.mubr.msk.f32.mxu0 %vm255_vm0, %v240_v6  ;;  %1765 = vmatprep.mubr.msk.f32.mxu1 %vm255_vm0, %v240_v6  ;;  %v250_v16 = vld [vmem:[%s2070_s17 + $0x60] sm:$0xff]  ;;  %v251_v17 = vld [vmem:[%s2070_s17 + $0x68] sm:$0xff]  ;;  %v252_v18 = vld [vmem:[%s2070_s17 + $0x70] sm:$0xff] }
  0x1f   : > { %v253_v19 = vld [vmem:[%s2070_s17 + $0x78] sm:$0xff] }
  0x20   : > { %1740 = vmatmul.mubr.msk.f32.gmra.mrb[2].mxu0 %vm255_vm0, %v241_v7  ;;  %1766 = vmatmul.mubr.msk.f32.gmra.mrb[2].mxu1 %vm255_vm0, %v241_v7 }
  0x21   : > { %1742 = vmatprep.mubr.msk.f32.mxu0 %vm255_vm0, %v242_v8  ;;  %1768 = vmatprep.mubr.msk.f32.mxu1 %vm255_vm0, %v242_v8 }
  0x24   : > { %1743 = vmatmul.mubr.msk.f32.gmra.mrb[4].mxu0 %vm255_vm0, %v243_v9  ;;  %1769 = vmatmul.mubr.msk.f32.gmra.mrb[4].mxu1 %vm255_vm0, %v243_v9 }
  0x25   : > { %1745 = vmatprep.mubr.msk.f32.mxu0 %vm255_vm0, %v244_v10  ;;  %1771 = vmatprep.mubr.msk.f32.mxu1 %vm255_vm0, %v244_v10 }
  0x28   : > { %1746 = vmatmul.mubr.msk.f32.gmra.mrb[6].mxu0 %vm255_vm0, %v245_v11  ;;  %1772 = vmatmul.mubr.msk.f32.gmra.mrb[6].mxu1 %vm255_vm0, %v245_v11 }
  0x29   : > { %1748 = vmatprep.mubr.msk.f32.mxu0 %vm255_vm0, %v246_v12  ;;  %1774 = vmatprep.mubr.msk.f32.mxu1 %vm255_vm0, %v246_v12 }
  0x2c   : > { %1749 = vmatmul.mubr.msk.f32.gmra.mrb[8].mxu0 %vm255_vm0, %v247_v13  ;;  %1775 = vmatmul.mubr.msk.f32.gmra.mrb[8].mxu1 %vm255_vm0, %v247_v13 }
  0x2d   : > { %1751 = vmatprep.mubr.msk.f32.mxu0 %vm255_vm0, %v248_v14  ;;  %1777 = vmatprep.mubr.msk.f32.mxu1 %vm255_vm0, %v248_v14 }
  0x30   : > { %1752 = vmatmul.mubr.msk.f32.gmra.mrb[10].mxu0 %vm255_vm0, %v249_v15  ;;  %1778 = vmatmul.mubr.msk.f32.gmra.mrb[10].mxu1 %vm255_vm0, %v249_v15 }
  0x31   : > { %1754 = vmatprep.mubr.msk.f32.mxu0 %vm255_vm0, %v250_v16  ;;  %1780 = vmatprep.mubr.msk.f32.mxu1 %vm255_vm0, %v250_v16 }
  0x34   : > { %1755 = vmatmul.mubr.msk.f32.gmra.mrb[12].mxu0 %vm255_vm0, %v251_v17  ;;  %1781 = vmatmul.mubr.msk.f32.gmra.mrb[12].mxu1 %vm255_vm0, %v251_v17 }
  0x35   : > { %1757 = vmatprep.mubr.msk.f32.mxu0 %vm255_vm0, %v252_v18  ;;  %1783 = vmatprep.mubr.msk.f32.mxu1 %vm255_vm0, %v252_v18 }
  0x38   : > { %1758 = vmatmul.mubr.msk.f32.gmra.mrb[14].mxu0 %vm255_vm0, %v253_v19  ;;  %1784 = vmatmul.mubr.msk.f32.gmra.mrb[14].mxu1 %vm255_vm0, %v253_v19 }
  0x39   : > { %1788 = vmatprep.mubr.msk.f32.mxu0 %vm255_vm0, %v238_v4  ;;  %1814 = vmatprep.mubr.msk.f32.mxu1 %vm255_vm0, %v238_v4  ;;  %v2176_v4 = vld [vmem:[%s2295_s3] ss:$0 sm:$0xff] }
  0x3c   : > { %1789 = vmatmul.mubr.msk.f32.vlgmr.msra.gmra.mrb[16].mxu0 %vm255_vm0, %v239_v5  ;;  %1815 = vmatmul.mubr.msk.f32.vlgmr.msra.gmra.mrb[16].mxu1 %vm255_vm0, %v239_v5 }
  0x3d   : > { %1791 = vmatprep.mubr.msk.f32.mxu0 %vm255_vm0, %v240_v6  ;;  %1817 = vmatprep.mubr.msk.f32.mxu1 %vm255_vm0, %v240_v6 }
  0x40   : > { %1792 = vmatmul.mubr.msk.f32.gmra.mrb[18].mxu0 %vm255_vm0, %v241_v7  ;;  %1818 = vmatmul.mubr.msk.f32.gmra.mrb[18].mxu1 %vm255_vm0, %v241_v7 }
  0x41   : > { %1794 = vmatprep.mubr.msk.f32.mxu0 %vm255_vm0, %v242_v8  ;;  %1820 = vmatprep.mubr.msk.f32.mxu1 %vm255_vm0, %v242_v8 }
  0x44   : > { %1795 = vmatmul.mubr.msk.f32.gmra.mrb[20].mxu0 %vm255_vm0, %v243_v9  ;;  %1821 = vmatmul.mubr.msk.f32.gmra.mrb[20].mxu1 %vm255_vm0, %v243_v9 }
  0x45   : > { %1797 = vmatprep.mubr.msk.f32.mxu0 %vm255_vm0, %v244_v10  ;;  %1823 = vmatprep.mubr.msk.f32.mxu1 %vm255_vm0, %v244_v10 }
  0x48   : > { %1798 = vmatmul.mubr.msk.f32.gmra.mrb[22].mxu0 %vm255_vm0, %v245_v11  ;;  %1824 = vmatmul.mubr.msk.f32.gmra.mrb[22].mxu1 %vm255_vm0, %v245_v11 }
  0x49   : > { %1800 = vmatprep.mubr.msk.f32.mxu0 %vm255_vm0, %v246_v12  ;;  %1826 = vmatprep.mubr.msk.f32.mxu1 %vm255_vm0, %v246_v12 }
  0x4c   : > { %1801 = vmatmul.mubr.msk.f32.gmra.mrb[24].mxu0 %vm255_vm0, %v247_v13  ;;  %1827 = vmatmul.mubr.msk.f32.gmra.mrb[24].mxu1 %vm255_vm0, %v247_v13 }
  0x4d   : > { %1803 = vmatprep.mubr.msk.f32.mxu0 %vm255_vm0, %v248_v14  ;;  %1829 = vmatprep.mubr.msk.f32.mxu1 %vm255_vm0, %v248_v14 }
  0x50   : > { %1804 = vmatmul.mubr.msk.f32.gmra.mrb[26].mxu0 %vm255_vm0, %v249_v15  ;;  %1830 = vmatmul.mubr.msk.f32.gmra.mrb[26].mxu1 %vm255_vm0, %v249_v15 }
  0x51   : > { %1806 = vmatprep.mubr.msk.f32.mxu0 %vm255_vm0, %v250_v16  ;;  %1832 = vmatprep.mubr.msk.f32.mxu1 %vm255_vm0, %v250_v16 }
  0x54   : > { %1807 = vmatmul.mubr.msk.f32.gmra.mrb[28].mxu0 %vm255_vm0, %v251_v17  ;;  %1833 = vmatmul.mubr.msk.f32.gmra.mrb[28].mxu1 %vm255_vm0, %v251_v17 }
  0x55   : > { %1809 = vmatprep.mubr.msk.f32.mxu0 %vm255_vm0, %v252_v18  ;;  %1835 = vmatprep.mubr.msk.f32.mxu1 %vm255_vm0, %v252_v18 }
  0x58   : > { %1810 = vmatmul.mubr.msk.f32.gmra.mrb[30].mxu0 %vm255_vm0, %v253_v19  ;;  %1836 = vmatmul.mubr.msk.f32.gmra.mrb[30].mxu1 %vm255_vm0, %v253_v19 }
  0xef   : > { %v1738_v20 = vpop.f32.mrb[0].mxu0  ;;  %v1764_v21 = vpop.f32.mrb[0].mxu1 }
  0xf0   : > { %v370_v22 = vpop.f32.mrb[1].mxu0  ;;  %v597_v23 = vpop.f32.mrb[1].mxu1 }
  0xf1   : > { %v1526_v24 = vpack.c.bf16 %v1738_v20, %v370_v22  ;;  %v1566_v25 = vpack.c.bf16 %v1764_v21, %v597_v23 }
  0xf3   : > { %1527 = vst [vmem:[%s2156_s26] sm:$0xff] %v1526_v24   ;;  %1650 = vst [vmem:[%s2156_s26 + $0x40] sm:$0xff] %v1566_v25   ;;  %v1741_v26 = vpop.f32.mrb[2].mxu0  ;;  %v1767_v27 = vpop.f32.mrb[2].mxu1 }
  0xf4   : > { %v380_v28 = vpop.f32.mrb[3].mxu0  ;;  %v607_v29 = vpop.f32.mrb[3].mxu1 }
  0xf5   : > { %v1531_v30 = vpack.c.bf16 %v1741_v26, %v380_v28  ;;  %v1571_v31 = vpack.c.bf16 %v1767_v27, %v607_v29 }
  0xf7   : > { %1643 = vst [vmem:[%s2156_s26 + $0x8] sm:$0xff] %v1531_v30   ;;  %1651 = vst [vmem:[%s2156_s26 + $0x48] sm:$0xff] %v1571_v31   ;;  %v1744_v32 = vpop.f32.mrb[4].mxu0  ;;  %v1770_v33 = vpop.f32.mrb[4].mxu1 }
  0xf8   : > { %v390_v34 = vpop.f32.mrb[5].mxu0  ;;  %v617_v35 = vpop.f32.mrb[5].mxu1 }
  0xf9   : > { %v1536_v36 = vpack.c.bf16 %v1744_v32, %v390_v34  ;;  %v1576_v37 = vpack.c.bf16 %v1770_v33, %v617_v35 }
  0xfb   : > { %1644 = vst [vmem:[%s2156_s26 + $0x10] sm:$0xff] %v1536_v36   ;;  %1652 = vst [vmem:[%s2156_s26 + $0x50] sm:$0xff] %v1576_v37   ;;  %v1747_v38 = vpop.f32.mrb[6].mxu0  ;;  %v1773_v39 = vpop.f32.mrb[6].mxu1 }
  0xfc   : > { %v400_v40 = vpop.f32.mrb[7].mxu0  ;;  %v627_v41 = vpop.f32.mrb[7].mxu1 }
  0xfd   : > { %v1541_v42 = vpack.c.bf16 %v1747_v38, %v400_v40  ;;  %v1581_v43 = vpack.c.bf16 %v1773_v39, %v627_v41 }
  0xff   : > { %1645 = vst [vmem:[%s2156_s26 + $0x18] sm:$0xff] %v1541_v42   ;;  %1653 = vst [vmem:[%s2156_s26 + $0x58] sm:$0xff] %v1581_v43   ;;  %v1750_v44 = vpop.f32.mrb[8].mxu0  ;;  %v1776_v45 = vpop.f32.mrb[8].mxu1 }
 0x100   : > { %v410_v46 = vpop.f32.mrb[9].mxu0  ;;  %v637_v47 = vpop.f32.mrb[9].mxu1 }
 0x101   : > { %v1546_v48 = vpack.c.bf16 %v1750_v44, %v410_v46  ;;  %v1586_v49 = vpack.c.bf16 %v1776_v45, %v637_v47 }
 0x103   : > { %1646 = vst [vmem:[%s2156_s26 + $0x20] sm:$0xff] %v1546_v48   ;;  %1654 = vst [vmem:[%s2156_s26 + $0x60] sm:$0xff] %v1586_v49   ;;  %v1753_v50 = vpop.f32.mrb[10].mxu0  ;;  %v1779_v51 = vpop.f32.mrb[10].mxu1 }
 0x104   : > { %v420_v52 = vpop.f32.mrb[11].mxu0  ;;  %v647_v53 = vpop.f32.mrb[11].mxu1 }
 0x105   : > { %v1551_v54 = vpack.c.bf16 %v1753_v50, %v420_v52  ;;  %v1591_v55 = vpack.c.bf16 %v1779_v51, %v647_v53 }
 0x107   : > { %1647 = vst [vmem:[%s2156_s26 + $0x28] sm:$0xff] %v1551_v54   ;;  %1655 = vst [vmem:[%s2156_s26 + $0x68] sm:$0xff] %v1591_v55   ;;  %v1756_v56 = vpop.f32.mrb[12].mxu0  ;;  %v1782_v57 = vpop.f32.mrb[12].mxu1 }
 0x108   : > { %v430_v58 = vpop.f32.mrb[13].mxu0  ;;  %v657_v59 = vpop.f32.mrb[13].mxu1 }
 0x109   : > { %v1556_v60 = vpack.c.bf16 %v1756_v56, %v430_v58  ;;  %v1596_v61 = vpack.c.bf16 %v1782_v57, %v657_v59 }
 0x10b   : > { %1648 = vst [vmem:[%s2156_s26 + $0x30] sm:$0xff] %v1556_v60   ;;  %1656 = vst [vmem:[%s2156_s26 + $0x70] sm:$0xff] %v1596_v61   ;;  %v1759_v62 = vpop.f32.mrb[14].mxu0  ;;  %v1785_v63 = vpop.f32.mrb[14].mxu1 }
 0x10c   : > { %v440_v0 = vpop.f32.mrb[15].mxu0  ;;  %v667_v1 = vpop.f32.mrb[15].mxu1 }
 0x10d   : > { %v1561_v2 = vpack.c.bf16 %v1759_v62, %v440_v0  ;;  %v1601_v3 = vpack.c.bf16 %v1785_v63, %v667_v1 }
 0x10f   : > { %1649 = vst [vmem:[%s2156_s26 + $0x38] sm:$0xff] %v1561_v2   ;;  %1657 = vst [vmem:[%s2156_s26 + $0x78] sm:$0xff] %v1601_v3   ;;  %v1790_v5 = vpop.f32.mrb[16].mxu0  ;;  %v1816_v6 = vpop.f32.mrb[16].mxu1 }
 0x110   : > { %v1065_v7 = vadd.f32 %v1816_v6, %v2176_v4  ;;  %v825_v8 = vpop.f32.mrb[17].mxu0  ;;  %v1059_v9 = vpop.f32.mrb[17].mxu1 }
 0x111   : > { %v1606_v10 = vpack.c.bf16 %v1790_v5, %v825_v8  ;;  %v1060_v11 = vadd.f32 %v2176_v4, %v1059_v9 }
 0x112   : > { %1139 = vst [vmem:[%s2182_s8 + $0x8] sm:$0xff] %v1065_v7 }
 0x113   : > { %1658 = vst [vmem:[%s2156_s26 + $0x80] sm:$0xff] %v1606_v10   ;;  %1138 = vst [vmem:[%s2182_s8] sm:$0xff] %v1060_v11  ;;  %v1793_v12 = vpop.f32.mrb[18].mxu0  ;;  %v1819_v13 = vpop.f32.mrb[18].mxu1 }
 0x114   : > { %v1075_v14 = vadd.f32 %v1819_v13, %v2176_v4  ;;  %v835_v15 = vpop.f32.mrb[19].mxu0  ;;  %v1069_v16 = vpop.f32.mrb[19].mxu1 }
 0x115   : > { %v1611_v17 = vpack.c.bf16 %v1793_v12, %v835_v15  ;;  %v1070_v18 = vadd.f32 %v2176_v4, %v1069_v16 }
 0x116   : > { %1141 = vst [vmem:[%s2182_s8 + $0x18] sm:$0xff] %v1075_v14 }
 0x117   : > { %1659 = vst [vmem:[%s2156_s26 + $0x88] sm:$0xff] %v1611_v17   ;;  %1140 = vst [vmem:[%s2182_s8 + $0x10] sm:$0xff] %v1070_v18  ;;  %v1796_v19 = vpop.f32.mrb[20].mxu0  ;;  %v1822_v20 = vpop.f32.mrb[20].mxu1 }
 0x118   : > { %v1085_v21 = vadd.f32 %v1822_v20, %v2176_v4  ;;  %v845_v22 = vpop.f32.mrb[21].mxu0  ;;  %v1079_v23 = vpop.f32.mrb[21].mxu1 }
 0x119   : > { %v1616_v24 = vpack.c.bf16 %v1796_v19, %v845_v22  ;;  %v1080_v25 = vadd.f32 %v2176_v4, %v1079_v23 }
 0x11a   : > { %1143 = vst [vmem:[%s2182_s8 + $0x28] sm:$0xff] %v1085_v21 }
 0x11b   : > { %1660 = vst [vmem:[%s2156_s26 + $0x90] sm:$0xff] %v1616_v24   ;;  %1142 = vst [vmem:[%s2182_s8 + $0x20] sm:$0xff] %v1080_v25  ;;  %v1799_v26 = vpop.f32.mrb[22].mxu0  ;;  %v1825_v27 = vpop.f32.mrb[22].mxu1 }
 0x11c   : > { %v1095_v28 = vadd.f32 %v1825_v27, %v2176_v4  ;;  %v855_v29 = vpop.f32.mrb[23].mxu0  ;;  %v1089_v30 = vpop.f32.mrb[23].mxu1 }
 0x11d   : > { %v1621_v31 = vpack.c.bf16 %v1799_v26, %v855_v29  ;;  %v1090_v32 = vadd.f32 %v2176_v4, %v1089_v30 }
 0x11e   : > { %1145 = vst [vmem:[%s2182_s8 + $0x38] sm:$0xff] %v1095_v28 }
 0x11f   : > { %1661 = vst [vmem:[%s2156_s26 + $0x98] sm:$0xff] %v1621_v31   ;;  %1144 = vst [vmem:[%s2182_s8 + $0x30] sm:$0xff] %v1090_v32  ;;  %v1802_v33 = vpop.f32.mrb[24].mxu0  ;;  %v1828_v34 = vpop.f32.mrb[24].mxu1 }
 0x120   : > { %v1105_v35 = vadd.f32 %v1828_v34, %v2176_v4  ;;  %v865_v36 = vpop.f32.mrb[25].mxu0  ;;  %v1099_v37 = vpop.f32.mrb[25].mxu1 }
 0x121   : > { %v1626_v38 = vpack.c.bf16 %v1802_v33, %v865_v36  ;;  %v1100_v39 = vadd.f32 %v2176_v4, %v1099_v37 }
 0x122   : > { %1147 = vst [vmem:[%s2182_s8 + $0x48] sm:$0xff] %v1105_v35 }
 0x123   : > { %1662 = vst [vmem:[%s2156_s26 + $0xa0] sm:$0xff] %v1626_v38   ;;  %1146 = vst [vmem:[%s2182_s8 + $0x40] sm:$0xff] %v1100_v39  ;;  %v1805_v40 = vpop.f32.mrb[26].mxu0  ;;  %v1831_v41 = vpop.f32.mrb[26].mxu1 }
 0x124   : > { %v1115_v42 = vadd.f32 %v1831_v41, %v2176_v4  ;;  %v875_v43 = vpop.f32.mrb[27].mxu0  ;;  %v1109_v44 = vpop.f32.mrb[27].mxu1 }
 0x125   : > { %v1631_v45 = vpack.c.bf16 %v1805_v40, %v875_v43  ;;  %v1110_v46 = vadd.f32 %v2176_v4, %v1109_v44 }
 0x126   : > { %1149 = vst [vmem:[%s2182_s8 + $0x58] sm:$0xff] %v1115_v42 }
 0x127   : > { %1663 = vst [vmem:[%s2156_s26 + $0xa8] sm:$0xff] %v1631_v45   ;;  %1148 = vst [vmem:[%s2182_s8 + $0x50] sm:$0xff] %v1110_v46  ;;  %v1808_v47 = vpop.f32.mrb[28].mxu0  ;;  %v1834_v48 = vpop.f32.mrb[28].mxu1 }
 0x128   : > { %v1125_v49 = vadd.f32 %v1834_v48, %v2176_v4  ;;  %v885_v50 = vpop.f32.mrb[29].mxu0  ;;  %v1119_v51 = vpop.f32.mrb[29].mxu1 }
 0x129   : > { %v1636_v52 = vpack.c.bf16 %v1808_v47, %v885_v50  ;;  %v1120_v53 = vadd.f32 %v2176_v4, %v1119_v51 }
 0x12a   : > { %1151 = vst [vmem:[%s2182_s8 + $0x68] sm:$0xff] %v1125_v49 }
 0x12b   : > { %1664 = vst [vmem:[%s2156_s26 + $0xb0] sm:$0xff] %v1636_v52   ;;  %1150 = vst [vmem:[%s2182_s8 + $0x60] sm:$0xff] %v1120_v53  ;;  %v1811_v54 = vpop.f32.mrb[30].mxu0  ;;  %v1837_v55 = vpop.f32.mrb[30].mxu1 }
 0x12c   : > { %v1135_v56 = vadd.f32 %v1837_v55, %v2176_v4  ;;  %v895_v57 = vpop.f32.mrb[31].mxu0  ;;  %v1129_v58 = vpop.f32.mrb[31].mxu1 }
 0x12d   : > { %v1641_v59 = vpack.c.bf16 %v1811_v54, %v895_v57  ;;  %v1130_v60 = vadd.f32 %v2176_v4, %v1129_v58 }
 0x12e   : > { %1153 = vst [vmem:[%s2182_s8 + $0x78] sm:$0xff] %v1135_v56 }
 0x12f   : > { %1665 = vst [vmem:[%s2156_s26 + $0xb8] sm:$0xff] %v1641_v59   ;;  %1152 = vst [vmem:[%s2182_s8 + $0x70] sm:$0xff] %v1130_v60 }
 0x130   : > { %s1521_s11 = sshll.u32 %s2027_s22, 10  ;;  %s1189_s12 = sshll.u32 %s2156_s26, 4  ;;  %s1190_s12 = int_to_ptr.vmem [resolvable:$true] %s1189_s12 }
 0x131   : > { %s1172_s15 = scalar_lea.hbm %s2296_s4, %s1521_s11  ;;  %s1966_s16 = smov 1024  }
 0x132   : > { %1839 = sst [smem:[#allocation7]] (%p2044_p5), %s1966_s16  ;;  %s1967_s17 = smov 4096  }
 0x133   : > { %1840 = sst [smem:[#allocation7 + $0x1]] (%p2044_p5), %s1967_s17  ;;  %s1968_s25 = smov 16  }
 0x134   : > { %1841 = sst [smem:[#allocation7 + $0x2]] (%p2044_p5), %s1968_s25  ;;  %s1969_s30 = smov 64  }
 0x135   : > { %1842 = sst [smem:[#allocation7 + $0x3]] (%p2044_p5), %s1969_s30  ;;  %s1970_s26 = smov 4  }
 0x136   : > { %1843 = sst [smem:[#allocation7 + $0x4]] (%p2044_p5), %s1969_s30  ;;  %s1971_s6 = smov [#allocation6]  }
 0x137   : > { %1844 = sst [smem:[#allocation7 + $0x5]] (%p2044_p5), %s1970_s26  ;;  %s1972_s7 = smov 0  }
 0x138   : > { %1845 = dma.general (%p2044_p5), %s1190_s12, 3072, %s1172_s15, %s1155_s9, %s1971_s6, [#allocation7], %s1972_s7, 0  }
 0x139   : > { %s1522_s11 = sshll.u32 %s2027_s22, 11  ;;  %s1218_s13 = sshll.u32 %s2182_s8, 4  ;;  %s2250_s13 = int_to_ptr.vmem [resolvable:$true] %s1218_s13 }
 0x13a   : > { %s2248_s17 = scalar_lea.hbm %s2297_s5, %s1522_s11  ;;  %s1898_s25 = scalar_lea.vmem %s2250_s13, 2048 }
 0x13b   : > { %p1899_p11 = scmp.ne.s32.totalorder %s2250_s13, %s1898_s25  ;;  %s1973_s9 = smov [#allocation4]  }
 0x13c   : > { %s1902_s12 = sshll.u32 %s1973_s9, 4  ;;  %s1903_s12 = int_to_ptr.vmem [resolvable:$false] %s1902_s12 }
 0x13d   : > { %p1900_p12 = pnand %p1899_p11, %p2044_p5  ;;  %s1904_s22 = scalar_lea.vmem %s1903_s12, 4096 }
 0x13e   : > { %p1905_p0 = scmp.lt.s32.totalorder %s2250_s13, %s1903_s12  ;;  %p1906_p1 = scmp.lt.s32.totalorder %s1904_s22, %s1898_s25 }
 0x13f   : > { %p1901_p13 = pneg %p1900_p12 }
 0x140   : > { %p1907_p2 = por %p1906_p1, %p1905_p0 }
 0x142   : > { %p1908_p3 = pnand %p1907_p2, %p1901_p13 }
 0x144   : > { %1911 = shalt.err (!%p1908_p3)
}
 0x145   : > { %s1912_s8 = scalar_lea.hbm %s2248_s17, 2048  ;;  %s1916_s26 = scalar_lea.hbm %s2297_s5, 8192 }
 0x146   : > { %p1913_p4 = scmp.ne.s32.totalorder %s2248_s17, %s1912_s8  ;;  %p1917_p9 = scmp.lt.u32.totalorder %s2248_s17, %s2297_s5 }
 0x147   : > { %p1918_p10 = scmp.lt.u32.totalorder %s1916_s26, %s1912_s8  ;;  %p1920_p12 = scmp.lt.u32.totalorder %s1912_s8, %s2248_s17 }
 0x148   : > { %p1914_p7 = pnand %p1913_p4, %p2044_p5 }
 0x149   : > { %p1919_p11 = por %p1918_p10, %p1917_p9 }
 0x14a   : > { %p1915_p8 = pneg %p1914_p7 }
 0x14b   : > { %p1921_p13 = por %p1920_p12, %p1919_p11 }
 0x14d   : > { %p1922_p0 = pnand %p1921_p13, %p1915_p8 }
 0x14f   : > { %1925 = shalt.err (!%p1922_p0)
}
 0x150   : > { %s1974_s11 = smov 128   ;;  %s1975_s14 = smov 8  }
 0x151   : > { %1846 = dma.vmem_to_hbm [thread:$0]  (%p2044_p5), %s2250_s13, 2048, %s2248_s17, %s1160_s10, %s1974_s11, %s1974_s11, %s1975_s14  }
 0x152 PF: > { %p1856_p1 = scmp.ge.s32.totalorder %s1964_s21, 2  ;;  %s1233_s16 = sand.u32 1, %s1952_s18  }
 0x153   : > { %s1234_s25 = scalar_lea.sflag [#allocation3], %s1233_s16 }
 0x154   : > { %p1850_p2 = pnand %p1856_p1, %p2048_p6 }
 0x156   : > { %1943 = dma.done.wait (!%p1850_p2), %s1234_s25, 3072  }
 0x157   : > { %1945 = vsyncadd (!%p1850_p2), %s1234_s25, 4294964224  ;;  %s1243_s9 = scalar_lea.sflag [#allocation5], %s1233_s16 }
 0x158   : > { %1947 = dma.done.wait (!%p1850_p2), %s1243_s9, 2048  }
 0x159   : > { %1949 = vsyncadd (!%p1850_p2), %s1243_s9, 4294965248  ;;  %p19_p5 = scmp.ge.s32.totalorder %s2031_s24, 6   ;;  %s2300_s18 = smov %s1956_s19 }
 0x15a   : > { %s2301_s19 = smov %s1960_s20  ;;  %s2302_s20 = smov %s2042_s27 }
 0x15b   : > { %s2303_s21 = smov %s2031_s24  ;;  %21 = sbr.rel (!%p19_p5) target bundleno = 5 (0x5), region = 97 }
 0x162   :  { %1248 = vsyncpa [#allocation3], 1 }
 0x163   :  { %1250 = vsyncpa [#allocation3 + $0x1], 1 }
 0x164   :  { %1251 = vsyncpa [#allocation5], 1 }
 0x165   :  { %1253 = vsyncpa [#allocation5 + $0x1], 1 }

</bundles_post_ra>
